<compile_context>
chip_gen: v5e
topology: v5e:2x2
jax: 0.10.0
libtpu: 0.0.40
codegen_flags: <defaults>
</compile_context>

<pallas_src>
import numpy as np
import jax
import jax.numpy as jnp
from jax import lax
from jax.experimental import pallas as pl
from jax.experimental.pallas import tpu as pltpu

NEG_SLOPE = 0.2
LANE = 128
TOWER_MAX_TILE = 4096          # lanes per tower grid step (multiple of 128)
VMEM_LIMIT = 32 * 1024 * 1024  # safe on v5e/v6e/v7x; blocks here are far smaller


def _leaky(x):
    # LeakyReLU(0.2) == max(x, 0.2*x): 2 VALU ops instead of cmp+select+mul.
    return jnp.maximum(x, NEG_SLOPE * x)


def _round_up(x, m):
    return (x + m - 1) // m * m


def _choose_rows(nrows, owl, target=2048, max_rows=64):
    """Rows per cost-volume block: multiple of 8, ~target elements per step."""
    r = _round_up(min(nrows, max(1, target // max(owl, 1))), 8)
    return int(max(8, min(r, max_rows)))


def _disp_phase_shift(d):
    """Disparity d = 4*q + s maps to phase plane (1-s)%4 shifted right by
    q (+1 if s>=2); columns left of the shift hit the clip value rt[:, row, 0]."""
    s = d % 4
    q = d // 4
    phase = (1 - s) % 4
    shift = q + (1 if s >= 2 else 0)
    return phase, shift


# ----------------------------------------------------------------------------
# Pallas kernels
# ----------------------------------------------------------------------------
def tower_kernel(x_ref, wr_ref, br_ref, we_ref, be_ref, o_ref):
    """conv_reduce (MXU matmul on transposed im2col patches) + conv_em (1x1).

    x_ref: (K, TILE_N); wr_ref: (16, K); we_ref: (16, 16); biases (16, 1).
    Output o_ref: (16, TILE_N) — lane-dense in N.
    """
    y = jnp.dot(wr_ref[...], x_ref[...], preferred_element_type=jnp.float32)
    y = _leaky(y + br_ref[...])
    y = jnp.dot(we_ref[...], y, preferred_element_type=jnp.float32)
    o_ref[...] = _leaky(y + be_ref[...])


def make_costvol_hyp_kernel(max_disp, halo):
    """Fused: in-kernel disparity gather + L1 cost volume + min/argmin +
    conv_hyp + p assembly, on a (rows, OWl) tile.

    lt_ref : (C, R, OWl)            left tower features
    rph_ref: (4, C, R, halo + OWl)  phase-split right features (+ clip halo)
    whcv_ref (13,1) / whlt_ref (13,C) / bh_ref (13,1): conv_hyp params in SMEM
    cv_ref : (D, R, OWl)            p_ref: (16, R, OWl)
    """
    def kernel(lt_ref, rph_ref, whcv_ref, whlt_ref, bh_ref, cv_ref, p_ref):
        lt = lt_ref[...]                                     # (C, R, OWl)
        C, R, OWl = lt.shape

        best = jnp.full((R, OWl), jnp.inf, dtype=jnp.float32)
        bidx = jnp.zeros((R, OWl), dtype=jnp.float32)
        # TODO(synk): for max_disp >= 32 switch to a grouped fori_loop and an
        #             MXU block-diagonal reduction over C.
        for d in range(max_disp):
            phase, shift = _disp_phase_shift(d)
            lo = halo - shift
            g = rph_ref[phase, :, :, lo:lo + OWl]            # (C, R, OWl) static slice
            cvd = jnp.sum(jnp.abs(lt - g), axis=0)           # outer-axis sum -> VPU adds
            cv_ref[d, :, :] = cvd                            # full-tile plane store
            better = cvd < best                              # strict < -> first-hit argmin
            bidx = jnp.where(better, jnp.float32(d), bidx)
            best = jnp.where(better, cvd, best)

        # conv_hyp on [cv_min ; lt]: 13 outputs via scalar-splat MACs (weights
        # in SMEM, zero extra HBM traffic; mem-bound kernel so VPU is fine).
        zero = jnp.zeros((R, OWl), jnp.float32)
        planes = [bidx, zero, zero]
        for o in range(13):
            acc = whcv_ref[o, 0] * best + bh_ref[o, 0]
            for c in range(C):
                acc = acc + whlt_ref[o, c] * lt[c]
            planes.append(_leaky(acc))
        # single unmasked 16-plane store
        p_ref[...] = jnp.stack(planes, axis=0)
    return kernel


# ----------------------------------------------------------------------------
# pallas_call wrappers (cdiv grids, no full-tensor padding)
# ----------------------------------------------------------------------------
def run_tower(xT, wr_mat, br2, we_mat, be2):
    K, n = xT.shape
    co = wr_mat.shape[0]
    tile = min(TOWER_MAX_TILE, _round_up(n, LANE))
    grid = (pl.cdiv(n, tile),)
    flops = 2 * n * co * (K + co)
    bytes_accessed = 4 * (n * (K + co) + co * (K + co + 2))
    return pl.pallas_call(
        tower_kernel,
        grid=grid,
        in_specs=[
            pl.BlockSpec((K, tile), lambda i: (0, i)),
            pl.BlockSpec((co, K), lambda i: (0, 0)),
            pl.BlockSpec((co, 1), lambda i: (0, 0)),
            pl.BlockSpec((co, co), lambda i: (0, 0)),
            pl.BlockSpec((co, 1), lambda i: (0, 0)),
        ],
        out_specs=pl.BlockSpec((co, tile), lambda i: (0, i)),
        out_shape=jax.ShapeDtypeStruct((co, n), jnp.float32),
        compiler_params=pltpu.CompilerParams(
            dimension_semantics=("parallel",),
            vmem_limit_bytes=VMEM_LIMIT),
        cost_estimate=pl.CostEstimate(flops=flops, transcendentals=0,
                                      bytes_accessed=bytes_accessed),
    )(xT, wr_mat, br2, we_mat, be2)


def run_costvol_hyp(lt_rows, rt_phx, wh_cv, wh_lt, bh2, max_disp, halo):
    C, nrows, owl = lt_rows.shape
    owx = rt_phx.shape[-1]                       # halo + owl
    R = _choose_rows(nrows, owl)
    grid = (pl.cdiv(nrows, R),)
    flops = nrows * owl * (3 * max_disp * C + 2 * 13 * (C + 1))
    bytes_accessed = 4 * nrows * (owl * (C + max_disp + 16) + 4 * C * owx)
    kernel = make_costvol_hyp_kernel(max_disp, halo)
    cv, p = pl.pallas_call(
        kernel,
        grid=grid,
        in_specs=[
            pl.BlockSpec((C, R, owl), lambda i: (0, i, 0)),
            pl.BlockSpec((4, C, R, owx), lambda i: (0, 0, i, 0)),
            pl.BlockSpec(memory_space=pltpu.MemorySpace.SMEM),
            pl.BlockSpec(memory_space=pltpu.MemorySpace.SMEM),
            pl.BlockSpec(memory_space=pltpu.MemorySpace.SMEM),
        ],
        out_specs=(
            pl.BlockSpec((max_disp, R, owl), lambda i: (0, i, 0)),
            pl.BlockSpec((16, R, owl), lambda i: (0, i, 0)),
        ),
        out_shape=(
            jax.ShapeDtypeStruct((max_disp, nrows, owl), jnp.float32),
            jax.ShapeDtypeStruct((16, nrows, owl), jnp.float32),
        ),
        compiler_params=pltpu.CompilerParams(
            dimension_semantics=("parallel",),
            vmem_limit_bytes=VMEM_LIMIT),
        cost_estimate=pl.CostEstimate(flops=flops, transcendentals=0,
                                      bytes_accessed=bytes_accessed),
    )(lt_rows, rt_phx, wh_cv, wh_lt, bh2)
    return cv, p


# ----------------------------------------------------------------------------
# JAX glue: patch extraction, phase split, layout
# ----------------------------------------------------------------------------
def _left_patches_T(l):
    """kernel == stride == 4, VALID: im2col is a pure reshape.
    Returns (cin*16, B*OH*OW), features ordered (c, kh, kw), N ordered (b,oh,ow)."""
    B, C, H, W = l.shape
    OH, OW = H // 4, W // 4
    x = l[:, :, :4 * OH, :4 * OW]
    x = x.reshape(B, C, OH, 4, OW, 4)            # (B, C, oh, kh, ow, kw)
    x = x.transpose(1, 3, 5, 0, 2, 4)            # (C, kh, kw, B, oh, ow)
    return x.reshape(C * 16, B * OH * OW), OH, OW


def _right_patches_T(r):
    """same_padding_conv, stride (4,1), kernel 4: kh folds into a reshape and
    the 4 kw taps are shifted width slices.  Returns (cin*16, B*OH*OW).
    TODO(synk): the kw taps duplicate the right image 4x; do the 4 shifted
                matmuls in-kernel with a halo to remove this traffic."""
    B, C, H, W = r.shape
    OH = -(-H // 4)
    OW = W
    pad_h = max((OH - 1) * 4 + 4 - H, 0)
    pad_w = max((OW - 1) * 1 + 4 - W, 0)
    rp = jnp.pad(r, ((0, 0), (0, 0),
                     (pad_h // 2, pad_h - pad_h // 2),
                     (pad_w // 2, pad_w - pad_w // 2)))
    taps = []
    for j in range(4):                           # kw taps
        xj = rp[:, :, :4 * OH, j:j + OW]         # (B, C, 4*OH, OW)
        taps.append(xj.reshape(B, C, OH, 4, OW))  # (B, C, oh, kh, ow)
    x = jnp.stack(taps, axis=0)                  # (kw, B, C, oh, kh, ow)
    x = x.transpose(2, 4, 0, 1, 3, 5)            # (C, kh, kw, B, oh, ow)
    return x.reshape(C * 16, B * OH * OW), OH, OW


def level_init_forward(l, r, params, max_disp):
    Wr, br, We, be, Wh, bh = params
    B, cin, H, W = l.shape
    Co = Wr.shape[0]                             # 16
    assert H % 4 == 0, "cost volume requires matching tower heights"

    Wr_mat = Wr.reshape(Co, cin * 16)            # (16, cin*16)
    We_mat = We.reshape(Co, Co)                  # (16, 16)
    Wh_mat = Wh.reshape(13, Co + 1)              # (13, 17)
    br2, be2, bh2 = br.reshape(-1, 1), be.reshape(-1, 1), bh.reshape(-1, 1)
    wh_cv, wh_lt = Wh_mat[:, :1], Wh_mat[:, 1:]

    # ---- left tower: conv2d(k=4, s=4, VALID) + conv_em ----------------------
    lpT, OHl, OWl = _left_patches_T(l)
    ltT = run_tower(lpT, Wr_mat, br2, We_mat, be2)       # (16, Nl)

    # ---- right tower: same_padding_conv(s=(4,1)) + conv_em ------------------
    rpT, OHr, OWr = _right_patches_T(r)
    rtT = run_tower(rpT, Wr_mat, br2, We_mat, be2)       # (16, Nr)

    assert OHr == OHl
    nrows = B * OHl

    lt_rows = ltT.reshape(Co, nrows, OWl)                # (C, rows, OWl)
    rt_rows = rtT.reshape(Co, nrows, OWr)                # (C, rows, OWr)

    # ---- phase-split right features (+ clip halo) — no D-fold inflation -----
    # gather index 4*ow + 1 - d  ->  phase plane (1-d)%4 shifted by a small
    # static amount; negative (clipped) indices read the halo = rt[:, row, 0].
    halo = max(_disp_phase_shift(d)[1] for d in range(max_disp))
    rt_ph = rt_rows[:, :, :4 * OWl].reshape(Co, nrows, OWl, 4)
    rt_ph = rt_ph.transpose(3, 0, 1, 2)                  # (4, C, rows, OWl)
    if halo > 0:
        col0 = jnp.broadcast_to(rt_rows[None, :, :, 0:1], (4, Co, nrows, halo))
        rt_phx = jnp.concatenate([col0, rt_ph], axis=-1)  # (4, C, rows, halo+OWl)
    else:
        rt_phx = rt_ph

    # ---- fused cost volume + min/argmin + conv_hyp + p assembly --------------
    cv_rows, p_rows = run_costvol_hyp(lt_rows, rt_phx, wh_cv, wh_lt, bh2,
                                      max_disp, halo)

    # back to NCHW outputs (match PyTorch)
    cv = cv_rows.reshape(max_disp, B, OHl, OWl).transpose(1, 0, 2, 3)
    p = p_rows.reshape(16, B, OHl, OWl).transpose(1, 0, 2, 3)
    return p, cv


# ----------------------------------------------------------------------------
# Pure-JAX reference (mirrors the PyTorch module) for validation
# ----------------------------------------------------------------------------
def ref_forward(l, r, params, max_disp):
    Wr, br, We, be, Wh, bh = params
    dn = ('NCHW', 'OIHW', 'NCHW')

    lt = lax.conv_general_dilated(l, Wr, (4, 4), 'VALID', dimension_numbers=dn)
    lt = _leaky(lt + br[None, :, None, None])
    lt = _leaky(jnp.einsum('bchw,oc->bohw', lt, We.reshape(16, 16)) + be[None, :, None, None])

    H, W = r.shape[2], r.shape[3]
    out_h, out_w = -(-H // 4), W
    pad_h = max((out_h - 1) * 4 + 4 - H, 0)
    pad_w = max((out_w - 1) * 1 + 4 - W, 0)
    r_pad = jnp.pad(r, ((0, 0), (0, 0),
                        (pad_h // 2, pad_h - pad_h // 2),
                        (pad_w // 2, pad_w - pad_w // 2)))
    rt = lax.conv_general_dilated(r_pad, Wr, (4, 1), 'VALID', dimension_numbers=dn)
    rt = _leaky(rt + br[None, :, None, None])
    rt = _leaky(jnp.einsum('bchw,oc->bohw', rt, We.reshape(16, 16)) + be[None, :, None, None])

    D = max_disp
    d_range = jnp.arange(D).reshape(1, 1, D, 1, 1)
    x_idx = jnp.arange(lt.shape[3]).reshape(1, 1, 1, 1, -1)
    gidx = jnp.clip(4 * x_idx + 1 - d_range, 0, rt.shape[3] - 1)
    gidx = jnp.broadcast_to(gidx, (rt.shape[0], rt.shape[1], D, rt.shape[2], lt.shape[3]))
    rt5 = jnp.broadcast_to(rt[:, :, None, :, :],
                           (rt.shape[0], rt.shape[1], D, rt.shape[2], rt.shape[3]))
    rt_g = jnp.take_along_axis(rt5, gidx, axis=-1)
    cv5 = lt[:, :, None, :, :] - rt_g
    cv = jnp.sum(jnp.abs(cv5), axis=1)                        # (B, D, H, W)
    cv_min = jnp.min(cv, axis=1, keepdims=True)
    d = jnp.argmin(cv, axis=1, keepdims=True).astype(jnp.float32)
    p_in = jnp.concatenate([cv_min, lt], axis=1)
    p = _leaky(jnp.einsum('bchw,oc->bohw', p_in, Wh.reshape(13, 17)) + bh[None, :, None, None])
    p = jnp.concatenate([d, jnp.zeros_like(d), jnp.zeros_like(d), p], axis=1)
    return p, cv


# ----------------------------------------------------------------------------
if __name__ == "__main__":
    key = jax.random.PRNGKey(0)
    kl, kr, k1, k2, k3, k4, k5, k6 = jax.random.split(key, 8)

    B, cin, H, W, max_disp = 2, 4, 16, 16, 8
    l = jax.random.normal(kl, (B, cin, H, W), jnp.float32)
    r = jax.random.normal(kr, (B, cin, H, W), jnp.float32)

    # deterministic synthetic parameters (shapes from LevelInit.__init__)
    Wr = 0.1 * jax.random.normal(k1, (16, cin, 4, 4), jnp.float32)   # conv_reduce
    br = 0.1 * jax.random.normal(k2, (16,), jnp.float32)
    We = 0.1 * jax.random.normal(k3, (16, 16, 1, 1), jnp.float32)    # conv_em[1]
    be = 0.1 * jax.random.normal(k4, (16,), jnp.float32)
    Wh = 0.1 * jax.random.normal(k5, (13, 17, 1, 1), jnp.float32)    # conv_hyp[0]
    bh = 0.1 * jax.random.normal(k6, (13,), jnp.float32)
    params = (Wr, br, We, be, Wh, bh)

    p, cv = level_init_forward(l, r, params, max_disp)
    p = jax.block_until_ready(p)
    cv = jax.block_until_ready(cv)

    p_ref, cv_ref = ref_forward(l, r, params, max_disp)
    np.testing.assert_allclose(np.asarray(cv), np.asarray(cv_ref), rtol=1e-3, atol=1e-3)
    np.testing.assert_allclose(np.asarray(p), np.asarray(p_ref), rtol=1e-3, atol=1e-3)

    print("KERNEL_OK")
</pallas_src>

<mosaic_0001>
module attributes {stable_mosaic.version = 11 : i64} {
  func.func @tower_kernel(%arg0: i32, %arg1: memref<64x128xf32, #tpu.memory_space<vmem>>, %arg2: memref<16x64xf32, #tpu.memory_space<vmem>>, %arg3: memref<16x1xf32, #tpu.memory_space<vmem>>, %arg4: memref<16x16xf32, #tpu.memory_space<vmem>>, %arg5: memref<16x1xf32, #tpu.memory_space<vmem>>, %arg6: memref<16x128xf32, #tpu.memory_space<vmem>>) attributes {dimension_semantics = [#tpu.dimension_semantics<parallel>], iteration_bounds = array<i64: 1>, scalar_prefetch = 0 : i64, scratch_operands = 0 : i64, tpu.core_type = #tpu.core_type<tc>, window_params = [{transform_indices = @transform_0, window_bounds = array<i64: 64, 128>}, {pipeline_mode = #tpu.pipeline_mode<synchronous>, transform_indices = @transform_1, window_bounds = array<i64: 16, 64>}, {pipeline_mode = #tpu.pipeline_mode<synchronous>, transform_indices = @transform_2, window_bounds = array<i64: 16, 1>}, {pipeline_mode = #tpu.pipeline_mode<synchronous>, transform_indices = @transform_3, window_bounds = array<i64: 16, 16>}, {pipeline_mode = #tpu.pipeline_mode<synchronous>, transform_indices = @transform_4, window_bounds = array<i64: 16, 1>}, {transform_indices = @transform_5, window_bounds = array<i64: 16, 128>}]} {
    %c0 = arith.constant 0 : index
    %c0_0 = arith.constant 0 : index
    %0 = vector.load %arg2[%c0, %c0_0] : memref<16x64xf32, #tpu.memory_space<vmem>>, vector<16x64xf32>
    %c0_1 = arith.constant 0 : index
    %c0_2 = arith.constant 0 : index
    %1 = vector.load %arg1[%c0_1, %c0_2] : memref<64x128xf32, #tpu.memory_space<vmem>>, vector<64x128xf32>
    %cst = arith.constant dense<0.000000e+00> : vector<16x128xf32>
    %2 = tpu.matmul %0, %1, %cst {dimension_numbers = #tpu.dot_dimension_numbers<[1], [0], [0], [1], [0, 0, 1, 1], [], []>} : vector<16x64xf32>, vector<64x128xf32>, vector<16x128xf32> -> vector<16x128xf32>
    %c0_3 = arith.constant 0 : index
    %c0_4 = arith.constant 0 : index
    %3 = vector.load %arg3[%c0_3, %c0_4] : memref<16x1xf32, #tpu.memory_space<vmem>>, vector<16x1xf32>
    %4 = vector.broadcast %3 : vector<16x1xf32> to vector<16x128xf32>
    %5 = arith.addf %2, %4 : vector<16x128xf32>
    %cst_5 = arith.constant 2.000000e-01 : f32
    %6 = vector.broadcast %cst_5 : f32 to vector<16x128xf32>
    %7 = arith.mulf %6, %5 : vector<16x128xf32>
    %8 = arith.maximumf %5, %7 : vector<16x128xf32>
    %c0_6 = arith.constant 0 : index
    %c0_7 = arith.constant 0 : index
    %9 = vector.load %arg4[%c0_6, %c0_7] : memref<16x16xf32, #tpu.memory_space<vmem>>, vector<16x16xf32>
    %cst_8 = arith.constant dense<0.000000e+00> : vector<16x128xf32>
    %10 = tpu.matmul %9, %8, %cst_8 {dimension_numbers = #tpu.dot_dimension_numbers<[1], [0], [0], [1], [0, 0, 1, 1], [], []>} : vector<16x16xf32>, vector<16x128xf32>, vector<16x128xf32> -> vector<16x128xf32>
    %c0_9 = arith.constant 0 : index
    %c0_10 = arith.constant 0 : index
    %11 = vector.load %arg5[%c0_9, %c0_10] : memref<16x1xf32, #tpu.memory_space<vmem>>, vector<16x1xf32>
    %12 = vector.broadcast %11 : vector<16x1xf32> to vector<16x128xf32>
    %13 = arith.addf %10, %12 : vector<16x128xf32>
    %cst_11 = arith.constant 2.000000e-01 : f32
    %14 = vector.broadcast %cst_11 : f32 to vector<16x128xf32>
    %15 = arith.mulf %14, %13 : vector<16x128xf32>
    %16 = arith.maximumf %13, %15 : vector<16x128xf32>
    %c0_12 = arith.constant 0 : index
    %c0_13 = arith.constant 0 : index
    %17 = vector.load %arg6[%c0_12, %c0_13] : memref<16x128xf32, #tpu.memory_space<vmem>>, vector<16x128xf32>
    tpu.vector_store %arg6[%c0_12, %c0_13], %16 {strides = array<i32>} : memref<16x128xf32, #tpu.memory_space<vmem>>, vector<16x128xf32>,
    return
  }
  func.func @transform_0(%arg0: i32) -> (i32, i32) {
    %c0_i32 = arith.constant 0 : i32
    %c0_i32_0 = arith.constant 0 : i32
    return %c0_i32, %arg0 : i32, i32
  }
  func.func @transform_1(%arg0: i32) -> (i32, i32) {
    %c0_i32 = arith.constant 0 : i32
    %c0_i32_0 = arith.constant 0 : i32
    %c0_i32_1 = arith.constant 0 : i32
    return %c0_i32, %c0_i32_0 : i32, i32
  }
  func.func @transform_2(%arg0: i32) -> (i32, i32) {
    %c0_i32 = arith.constant 0 : i32
    %c0_i32_0 = arith.constant 0 : i32
    %c0_i32_1 = arith.constant 0 : i32
    return %c0_i32, %c0_i32_0 : i32, i32
  }
  func.func @transform_3(%arg0: i32) -> (i32, i32) {
    %c0_i32 = arith.constant 0 : i32
    %c0_i32_0 = arith.constant 0 : i32
    %c0_i32_1 = arith.constant 0 : i32
    return %c0_i32, %c0_i32_0 : i32, i32
  }
  func.func @transform_4(%arg0: i32) -> (i32, i32) {
    %c0_i32 = arith.constant 0 : i32
    %c0_i32_0 = arith.constant 0 : i32
    %c0_i32_1 = arith.constant 0 : i32
    return %c0_i32, %c0_i32_0 : i32, i32
  }
  func.func @transform_5(%arg0: i32) -> (i32, i32) {
    %c0_i32 = arith.constant 0 : i32
    %c0_i32_0 = arith.constant 0 : i32
    return %c0_i32, %arg0 : i32, i32
  }
}

</mosaic_0001>

<bundles_post_ra>
// kernel: tpu_custom_call.1
= control target key start
LH: loop header
LB: loop body
LE: loop exit
PB: predicated region body
PF: predicated region fallthrough
CT: control target
= control target key end

     0   :  { %v189_v3 = vmov 0   ;;  %s274_s0 = inlined_call_operand.vmem [shape: f32[64,32], index: 0, kind: input, shape index: {}]   ;;  %s275_s1 = inlined_call_operand.vmem [shape: f32[16,64], index: 1, kind: input, shape index: {}]   ;;  %s276_s2 = inlined_call_operand.vmem [shape: f32[16,1], index: 2, kind: input, shape index: {}]   ;;  %s277_s3 = inlined_call_operand.vmem [shape: f32[16,16], index: 3, kind: input, shape index: {}]   ;;  %s278_s4 = inlined_call_operand.vmem [shape: f32[16,1], index: 4, kind: input, shape index: {}]   ;;  %s279_s5 = inlined_call_operand.hbm [shape: f32[16,32], index: 5, kind: output, shape index: {}]  }
   0x1   :  { %v30_v0 = vld [vmem:[%s274_s0 + $0x38] sm:$0xff]  ;;  %v29_v1 = vld [vmem:[%s274_s0 + $0x30] sm:$0xff]  ;;  %v28_v2 = vld [vmem:[%s274_s0 + $0x28] sm:$0xff]  ;;  %161 = vset.pattern.permute.xlu0 %v189_v3  ;;  %162 = vset.pattern.permute.xlu1 %v189_v3 }
   0x2   :  { %58 = vmatpush.msra.mxu0 %v30_v0  ;;  %149 = vmatpush.msra.mxu2 %v30_v0  ;;  %v32_v4 = vld [vmem:[%s276_s2 + $0x8] sm:$0xff]  ;;  %v27_v5 = vld [vmem:[%s274_s0 + $0x20] sm:$0xff] }
   0x3   :  { %40 = vperm.xlu0 %161, %v32_v4  }
   0x4   :  { %59 = vmatpush.msra.mxu0 %v29_v1  ;;  %150 = vmatpush.msra.mxu2 %v29_v1 }
   0x5   :  { %10 = vsyncpa [#allocation3], 0  ;;  %v26_v6 = vld [vmem:[%s274_s0 + $0x18] sm:$0xff]  ;;  %v25_v7 = vld [vmem:[%s274_s0 + $0x10] sm:$0xff]  ;;  %vm43_vm0 = vcmask 523264   ;;  %vm91_vm1 = vcmask 130048  }
   0x6   :  { %60 = vmatpush.msra.mxu0 %v28_v2  ;;  %151 = vmatpush.msra.mxu2 %v28_v2  ;;  %v31_v8 = vld [vmem:[%s276_s2] sm:$0xff]  ;;  %v24_v9 = vld [vmem:[%s274_s0 + $0x8] sm:$0xff]  ;;  %s190_s21 = smov [#allocation2]   ;;  %s133_s25 = sshll.u32 %s279_s5, 4  ;;  %s134_s25 = int_to_ptr.hbm [resolvable:$true] %s133_s25 }
   0x7   :  { %v23_v10 = vld [vmem:[%s274_s0] sm:$0xff]  ;;  %v22_v12 = vld [vmem:[%s275_s1 + $0x8] sm:$0xff]  ;;  %s131_s22 = sshll.u32 %s190_s21, 4  ;;  %s192_s26 = smov 8   ;;  %s132_s22 = int_to_ptr.vmem [resolvable:$true] %s131_s22 }
   0x8   :  { %61 = vmatpush.msra.mxu0 %v27_v5  ;;  %152 = vmatpush.msra.mxu2 %v27_v5  ;;  %v21_v11 = vld [vmem:[%s275_s1] sm:$0xff]  ;;  %v80_v15 = vld [vmem:[%s278_s4 + $0x8] sm:$0xff] }
   0x9   :  { %v79_v13 = vld [vmem:[%s278_s4] sm:$0xff]  ;;  %v78_v26 = vld [vmem:[%s277_s3 + $0x8] sm:$0xff] }
   0xa   :  { %62 = vmatpush.msra.mxu0 %v26_v6  ;;  %153 = vmatpush.msra.mxu2 %v26_v6  ;;  %v77_v25 = vld [vmem:[%s277_s3] sm:$0xff]  ;;  %s191_s3 = smov 128  }
   0xb   :  { %35 = vperm.xlu0 %161, %v31_v8   ;;  %83 = vperm.xlu1 %162, %v79_v13  }
   0xc   :  { %63 = vmatpush.msra.mxu0 %v25_v7  ;;  %154 = vmatpush.msra.mxu2 %v25_v7 }
   0xe   :  { %64 = vmatpush.msra.mxu0 %v24_v9  ;;  %155 = vmatpush.msra.mxu2 %v24_v9 }
  0x10   :  { %65 = vmatpush.msra.mxu0 %v23_v10  ;;  %156 = vmatpush.msra.mxu2 %v23_v10 }
  0x11   :  { %145 = vmatmul.msk.f32.vlgmr.msra.gmra.mxu0 %vm43_vm0, %v21_v11  ;;  %146 = vmatmul.msk.f32.vlgmr.msra.gmra.mxu2 %vm43_vm0, %v22_v12 }
  0x13   :  { %88 = vperm.xlu1 %162, %v80_v15  }
  0x75   :  { %v41_v14 = vpop.permute.xlu0 %40 }
  0x7d   :  { %v36_v16 = vpop.permute.xlu0 %35  ;;  %v84_v27 = vpop.permute.xlu1 %83 }
  0x85   :  { %v89_v32 = vpop.permute.xlu1 %88 }
  0x8e   :  { %v67_v17 = vpop.f32.mrf.mxu0 }
  0x8f   :  { %v68_v18 = vadd.f32 %v67_v17, %v36_v16 }
  0x91   :  { %v73_v21 = vmul.f32 0.2, %v68_v18 }
  0x93   :  { %v75_v24 = vmax.f32 %v68_v18, %v73_v21 }
  0x94   :  { %v70_v19 = vpop.f32.mrf.mxu2 }
  0x95   :  { %v71_v20 = vadd.f32 %v70_v19, %v41_v14 }
  0x97   :  { %v74_v22 = vmul.f32 0.2, %v71_v20 }
  0x99   :  { %v76_v23 = vmax.f32 %v71_v20, %v74_v22 }
  0x9b   :  { %112 = vmatpush.msra.mxu1 %v76_v23 }
  0x9d   :  { %113 = vmatpush.msra.mxu1 %v75_v24 }
  0x9e   :  { %147 = vmatmul.msk.f32.vlgmr.msra.gmra.mxu1 %vm91_vm1, %v77_v25 }
  0xa6   :  { %148 = vmatmul.msk.f32.gmra.mxu1 %vm91_vm1, %v78_v26 }
 0x11b   :  { %v115_v28 = vpop.f32.mrf.mxu1 }
 0x11c   :  { %v116_v29 = vadd.f32 %v115_v28, %v84_v27 }
 0x11e   :  { %v121_v30 = vmul.f32 0.2, %v116_v29 }
 0x120   :  { %v123_v31 = vmax.f32 %v116_v29, %v121_v30 }
 0x122   :  { %125 = vst [vmem:[#allocation2] sm:$0xff] %v123_v31 }
 0x123   :  { %v118_v33 = vpop.f32.mrf.mxu1 }
 0x124   :  { %v119_v34 = vadd.f32 %v118_v33, %v89_v32 }
 0x126   :  { %v122_v35 = vmul.f32 0.2, %v119_v34 }
 0x128   :  { %v124_v36 = vmax.f32 %v119_v34, %v122_v35 }
 0x12a   :  { %126 = vst [vmem:[#allocation2 + $0x8] sm:$0xff] %v124_v36 }
 0x12b   :  { %139 = dma.vmem_to_hbm [thread:$0]  %s132_s22, 256, %s134_s25, [#allocation3], %s191_s3, %s191_s3, %s192_s26  }
 0x12c   :  { %187 = dma.done.wait [#allocation3], 256  }
 0x12d   :  { %188 = vsyncadd [#allocation3], 4294967040 }
 0x12e   :  { %144 = vsyncpa [#allocation3], 1 }

</bundles_post_ra>
